<compile_context>
chip_gen: v7x
topology: tpu7x:2x2x1
jax: 0.10.0
libtpu: 0.0.40
codegen_flags: <defaults>
</compile_context>

<pallas_src>
import jax
import jax.numpy as jnp
from jax.experimental import pallas as pl
from jax.experimental.pallas import tpu as pltpu

K_SIZE = 27  # kernel_size=[3] -> 3x3x3 neighborhood; stride=1 keeps N nodes.


def _conv_relu_kernel(w_ref, p_ref, o_ref):
    # (C_out, KC) @ (KC, tile_m) -> (C_out, tile_m); fused ReLU; lane-dense store.
    acc = jnp.dot(w_ref[...], p_ref[...], preferred_element_type=jnp.float32)
    o_ref[...] = jnp.maximum(acc, 0.0).astype(o_ref.dtype)


def _pick_tile_m(n, kc, c_out, *, in_bytes=2, out_bytes=4,
                 vmem_budget=40 * 1024 * 1024, max_tile=1024):
    """Largest node-tile (multiple of 128) whose working set fits the VMEM budget.

    VMEM model: resident weight (double-buffered allocation) + double-buffered
    patch input tile + double-buffered f32 output tile.
    """
    fixed = 2 * c_out * kc * in_bytes
    per_m = 2 * kc * in_bytes + 2 * c_out * out_bytes
    tile = max((vmem_budget - fixed) // per_m, 128)
    tile = (tile // 128) * 128
    tile = min(tile, max_tile, pl.cdiv(n, 128) * 128)
    return max(tile, 128)


def octree_conv_relu(data_in, neigh, weight, *, compute_dtype=jnp.bfloat16):
    """Forward of OctreeConvRelu.

    data_in: (1, C_in, N, 1) float32 (ocnn NCHW convention)
    neigh:   (N, 27) int32 octree neighbor table at this depth; -1 = empty.
    weight:  (C_out, C_in, 27) float32 conv weights (ocnn.OctreeConv has no bias).
    returns: (1, C_out, N, 1) float32
    """
    _, c_in, n, _ = data_in.shape
    c_out = weight.shape[0]
    k = neigh.shape[1]
    assert k == K_SIZE and weight.shape == (c_out, c_in, k)

    kc = k * c_in
    in_bytes = jnp.dtype(compute_dtype).itemsize

    # Node tiling: pad only the tiny index table, never the feature data.
    tile_m = _pick_tile_m(n, kc, c_out, in_bytes=in_bytes)
    n_pad = pl.cdiv(n, tile_m) * tile_m

    # ---- octree2col (data-dependent gather; stays in XLA) ----
    # NCHW is already channel-major, so no input transpose is needed.
    xT = data_in[0, :, :, 0]                                            # (C_in, N)
    xT_src = jnp.concatenate([xT, jnp.zeros((c_in, 1), xT.dtype)],
                             axis=1).astype(compute_dtype)              # (C_in, N+1), col N = zeros
    idx = jnp.where(neigh < 0, n, neigh).astype(jnp.int32)              # -1 -> zero column
    idx = jnp.pad(idx, ((0, n_pad - n), (0, 0)), constant_values=n)     # padded nodes -> zero column
    # Single gather pass, already in the transposed GEMM layout (bf16 halves bytes).
    colsT = xT_src[:, idx.T]                                            # (C_in, K, N_pad)
    patchesT = colsT.reshape(kc, n_pad)                                 # metadata-only reshape

    # weight (C_out, C_in, K) row-major flattens to exactly the patch row order.
    w2d = weight.reshape(c_out, kc).astype(compute_dtype)               # (C_out, C_in*K)

    out = pl.pallas_call(
        _conv_relu_kernel,
        out_shape=jax.ShapeDtypeStruct((c_out, n_pad), jnp.float32),
        grid_spec=pltpu.PrefetchScalarGridSpec(
            num_scalar_prefetch=0,
            grid=(n_pad // tile_m,),
            in_specs=[
                pl.BlockSpec((c_out, kc), lambda i: (0, 0)),   # whole weight, resident
                pl.BlockSpec((kc, tile_m), lambda i: (0, i)),  # node tile of im2col'd features
            ],
            out_specs=pl.BlockSpec((c_out, tile_m), lambda i: (0, i)),
        ),
        compiler_params=pltpu.CompilerParams(
            dimension_semantics=("parallel",),
            vmem_limit_bytes=48 * 1024 * 1024,
        ),
    )(w2d, patchesT)

    # (C_out, N_pad) -> (1, C_out, N, 1): slice + reshape only, no transpose.
    return out[:, :n][None, :, :, None]


if __name__ == "__main__":
    key = jax.random.PRNGKey(0)
    c_in, c_out = 4, 8
    n_nodes = 200          # octree node count at this depth (not a tile multiple)
    k = K_SIZE

    k1, k2, k3 = jax.random.split(key, 3)
    data_in = jax.random.normal(k1, (1, c_in, n_nodes, 1), jnp.float32)

    # Synthetic octree neighbor table: random neighbors, -1 = empty, center = self.
    neigh = jax.random.randint(k2, (n_nodes, k), minval=-1,
                               maxval=n_nodes).astype(jnp.int32)
    neigh = neigh.at[:, k // 2].set(jnp.arange(n_nodes, dtype=jnp.int32))

    # Deterministic xavier-ish weight init (ocnn.OctreeConv has no bias).
    fan_in = c_in * k
    weight = jax.random.normal(k3, (c_out, c_in, k), jnp.float32) / jnp.sqrt(fan_in)

    out = jax.block_until_ready(octree_conv_relu(data_in, neigh, weight))

    # Plain-JAX reference (same bf16 quantization of operands, f32 accumulation).
    xT = data_in[0, :, :, 0]
    xT_src = jnp.concatenate([xT, jnp.zeros((c_in, 1), xT.dtype)], axis=1)
    idx = jnp.where(neigh < 0, n_nodes, neigh)
    cols = xT_src.astype(jnp.bfloat16).astype(jnp.float32)[:, idx]     # (C_in, N, 27)
    w_q = weight.astype(jnp.bfloat16).astype(jnp.float32)
    ref = jnp.einsum("ock,cmk->om", w_q, cols,
                     precision=jax.lax.Precision.HIGHEST)
    ref = jnp.maximum(ref, 0.0)[None, :, :, None]                       # (1, C_out, N, 1)

    assert out.shape == (1, c_out, n_nodes, 1)
    assert jnp.allclose(out, ref, atol=1e-3, rtol=1e-3)
    print("KERNEL_OK")
</pallas_src>

<mosaic_0001>
module attributes {stable_mosaic.version = 11 : i64} {
  func.func @_conv_relu_kernel(%arg0: i32, %arg1: memref<8x108xbf16, #tpu.memory_space<vmem>>, %arg2: memref<108x256xbf16, #tpu.memory_space<vmem>>, %arg3: memref<8x256xf32, #tpu.memory_space<vmem>>) attributes {dimension_semantics = [#tpu.dimension_semantics<parallel>], iteration_bounds = array<i64: 1>, scalar_prefetch = 0 : i64, scratch_operands = 0 : i64, tpu.core_type = #tpu.core_type<tc>, window_params = [{pipeline_mode = #tpu.pipeline_mode<synchronous>, transform_indices = @transform_0, window_bounds = array<i64: 8, 108>}, {transform_indices = @transform_1, window_bounds = array<i64: 108, 256>}, {transform_indices = @transform_2, window_bounds = array<i64: 8, 256>}]} {
    %c0 = arith.constant 0 : index
    %c0_0 = arith.constant 0 : index
    %0 = vector.load %arg1[%c0, %c0_0] : memref<8x108xbf16, #tpu.memory_space<vmem>>, vector<8x108xbf16>
    %c0_1 = arith.constant 0 : index
    %c0_2 = arith.constant 0 : index
    %1 = vector.load %arg2[%c0_1, %c0_2] : memref<108x256xbf16, #tpu.memory_space<vmem>>, vector<108x256xbf16>
    %cst = arith.constant dense<0.000000e+00> : vector<8x256xf32>
    %2 = tpu.matmul %0, %1, %cst {dimension_numbers = #tpu.dot_dimension_numbers<[1], [0], [0], [1], [0, 0, 1, 1], [], []>} : vector<8x108xbf16>, vector<108x256xbf16>, vector<8x256xf32> -> vector<8x256xf32>
    %cst_3 = arith.constant 0.000000e+00 : f32
    %3 = vector.broadcast %cst_3 : f32 to vector<8x256xf32>
    %4 = arith.maximumf %2, %3 : vector<8x256xf32>
    %c0_4 = arith.constant 0 : index
    %c0_5 = arith.constant 0 : index
    %5 = vector.load %arg3[%c0_4, %c0_5] : memref<8x256xf32, #tpu.memory_space<vmem>>, vector<8x256xf32>
    tpu.vector_store %arg3[%c0_4, %c0_5], %4 {strides = array<i32>} : memref<8x256xf32, #tpu.memory_space<vmem>>, vector<8x256xf32>,
    return
  }
  func.func @transform_0(%arg0: i32) -> (i32, i32) {
    %c0_i32 = arith.constant 0 : i32
    %c0_i32_0 = arith.constant 0 : i32
    %c0_i32_1 = arith.constant 0 : i32
    return %c0_i32, %c0_i32_0 : i32, i32
  }
  func.func @transform_1(%arg0: i32) -> (i32, i32) {
    %c0_i32 = arith.constant 0 : i32
    %c0_i32_0 = arith.constant 0 : i32
    return %c0_i32, %arg0 : i32, i32
  }
  func.func @transform_2(%arg0: i32) -> (i32, i32) {
    %c0_i32 = arith.constant 0 : i32
    %c0_i32_0 = arith.constant 0 : i32
    return %c0_i32, %arg0 : i32, i32
  }
}

</mosaic_0001>

<bundles_post_ra>
// kernel: tpu_custom_call.1
= control target key start
LH: loop header
LB: loop body
LE: loop exit
PB: predicated region body
PF: predicated region fallthrough
CT: control target
= control target key end

     0   :  { %7 = vsyncpa [#allocation3], 0  ;;  %s373_s0 = inlined_call_operand.hbm [shape: bf16[8,108], index: 0, kind: input, shape index: {}]   ;;  %s374_s1 = inlined_call_operand.hbm [shape: bf16[108,256], index: 1, kind: input, shape index: {}]   ;;  %s375_s2 = inlined_call_operand.hbm [shape: f32[8,256], index: 2, kind: output, shape index: {}]  }
   0x1   :  { %8 = vsyncpa [#allocation6], 0 }
   0x2   :  { %9 = vsyncpa [#allocation4], 0  ;;  %s309_s9 = smov [#allocation2]   ;;  %s310_s11 = smov [#allocation5]  }
   0x3   :  { %s16_s10 = sshll.u32 %s309_s9, 4  ;;  %s25_s12 = sshll.u32 %s310_s11, 4  ;;  %s17_s10 = int_to_ptr.vmem [resolvable:$true] %s16_s10  ;;  %s330_s12 = int_to_ptr.vmem [resolvable:$true] %s25_s12 }
   0x4   :  { %s237_s15 = scalar_lea.hbm %s373_s0, 64 }
   0x5   :  { %p238_p0 = scmp.ne.s32.totalorder %s373_s0, %s237_s15  ;;  %p241_p1 = scmp.lt.u32.totalorder %s237_s15, %s373_s0 }
   0x7   :  { %p243_p2 = pnand %p241_p1, %p238_p0 }
   0x9   :  { %246 = shalt.err (!%p243_p2)
}
   0xa   :  { %s247_s20 = scalar_lea.vmem %s17_s10, 64  ;;  %p252_p4 = scmp.lt.s32.totalorder %s17_s10, %s17_s10 }
   0xb   :  { %p248_p3 = scmp.ne.s32.totalorder %s17_s10, %s247_s20  ;;  %p253_p5 = scmp.lt.s32.totalorder %s247_s20, %s247_s20 }
   0xd   :  { %p254_p6 = por %p253_p5, %p252_p4 }
   0xf   :  { %p255_p7 = pnand %p254_p6, %p248_p3 }
  0x11   :  { %258 = shalt.err (!%p255_p7)
}
  0x12   :  { %19 = dma.hbm_to_vmem [thread:$0]  %s373_s0, 64, %s17_s10, [#allocation3]  }
  0x13   :  { %s259_s25 = scalar_lea.hbm %s374_s1, 1792 }
  0x14   :  { %p260_p8 = scmp.ne.s32.totalorder %s374_s1, %s259_s25  ;;  %p263_p9 = scmp.lt.u32.totalorder %s259_s25, %s374_s1 }
  0x16   :  { %p265_p10 = pnand %p263_p9, %p260_p8 }
  0x18   :  { %268 = shalt.err (!%p265_p10)
}
  0x19   :  { %s269_s30 = scalar_lea.vmem %s330_s12, 1792  ;;  %p274_p12 = scmp.lt.s32.totalorder %s330_s12, %s330_s12 }
  0x1a   :  { %p270_p11 = scmp.ne.s32.totalorder %s330_s12, %s269_s30  ;;  %p275_p13 = scmp.lt.s32.totalorder %s269_s30, %s269_s30 }
  0x1c   :  { %p276_p0 = por %p275_p13, %p274_p12 }
  0x1e   :  { %p277_p1 = pnand %p276_p0, %p270_p11 }
  0x20   :  { %280 = shalt.err (!%p277_p1)
}
  0x21   :  { %s311_s0 = smov 128   ;;  %s312_s3 = smov 8  }
  0x22   :  { %31 = dma.hbm_to_vmem [thread:$0]  %s374_s1, 1792, %s330_s12, [#allocation6], %s311_s0, %s311_s0, %s312_s3  }
  0x23   :  { %303 = dma.done.wait [#allocation3], 64  }
  0x24   :  { %304 = vsyncadd [#allocation3], 4294967232 }
  0x25   :  { %305 = dma.done.wait [#allocation6], 1792  }
  0x26   :  { %306 = vsyncadd [#allocation6], 4294965504  ;;  %v313_v0 = vmov 0   ;;  %v216_v1 = vld [vmem:[#allocation5 + $0x4] ss:$8 sps:$4 sm:$0xff]   ;;  %vm126_vm0 = vcmask 1045504  }
  0x27   :  { %165 = vmatprep.mubr.bf16.mxu0 %v313_v0  ;;  %v218_v2 = vld [vmem:[#allocation5] ss:$8 sps:$4 sm:$0xff]   ;;  %133 = vmatprep.subr.bf16.mxu0 %v216_v1  ;;  %v219_v3 = vld [vmem:[#allocation5 + $0x14] ss:$8 sps:$4 sm:$0xff]   ;;  %v221_v4 = vld [vmem:[#allocation5 + $0x10] ss:$8 sps:$4 sm:$0xff]  }
  0x28   :  { %134 = vmatpush1.bf16.msra.mxu0 %v218_v2  ;;  %v222_v5 = vld [vmem:[#allocation5 + $0x24] ss:$8 sps:$4 sm:$0xff]   ;;  %v224_v6 = vld [vmem:[#allocation5 + $0x20] ss:$8 sps:$4 sm:$0xff]   ;;  %v225_v7 = vld [vmem:[#allocation5 + $0x34] ss:$8 sps:$4 sm:$0xff]  }
  0x29   :  { %135 = vmatprep.subr.bf16.mxu0 %v219_v3  ;;  %v227_v8 = vld [vmem:[#allocation5 + $0x30] ss:$8 sps:$4 sm:$0xff]   ;;  %v228_v9 = vld [vmem:[#allocation5 + $0x44] ss:$8 sps:$4 sm:$0xff]   ;;  %v230_v10 = vld [vmem:[#allocation5 + $0x40] ss:$8 sps:$4 sm:$0xff]  }
  0x2a   :  { %v231_v11 = vld [vmem:[#allocation5 + $0x54] ss:$8 sps:$4 sm:$0xff]   ;;  %v233_v12 = vld [vmem:[#allocation5 + $0x50] ss:$8 sps:$4 sm:$0xff]   ;;  %vm122_vm1 = vcmask 883712   ;;  %s314_s1 = smov [#allocation7]  }
  0x2b   :  { %v234_v13 = vld [vmem:[#allocation5 + $0x64] ss:$8 sps:$4 sm:$0x3f]   ;;  %v236_v14 = vld [vmem:[#allocation5 + $0x60] ss:$8 sps:$4 sm:$0x3f]  }
  0x2c   :  { %136 = vmatpush1.bf16.msra.mxu0 %v221_v4  ;;  %v128_v15 = vsel %vm126_vm0, %v236_v14, 0  ;;  %v39_v16 = vld [vmem:[#allocation2] sm:$0xf]  ;;  %s184_s6 = sshll.u32 %s314_s1, 4  ;;  %s185_s6 = int_to_ptr.vmem [resolvable:$true] %s184_s6 }
  0x2d   :  { %137 = vmatprep.subr.bf16.mxu0 %v222_v5  ;;  %s281_s7 = scalar_lea.vmem %s185_s6, 256  ;;  %p286_p3 = scmp.lt.s32.totalorder %s185_s6, %s185_s6 }
  0x2e   :  { %p282_p2 = scmp.ne.s32.totalorder %s185_s6, %s281_s7  ;;  %p287_p4 = scmp.lt.s32.totalorder %s281_s7, %s281_s7 }
  0x30   :  { %138 = vmatpush1.bf16.msra.mxu0 %v224_v6  ;;  %p288_p5 = por %p287_p4, %p286_p3 }
  0x31   :  { %139 = vmatprep.subr.bf16.mxu0 %v225_v7 }
  0x32   :  { %p289_p6 = pnand %p288_p5, %p282_p2 }
  0x34   :  { %140 = vmatpush1.bf16.msra.mxu0 %v227_v8 }
  0x35   :  { %141 = vmatprep.subr.bf16.mxu0 %v228_v9 }
  0x38   :  { %142 = vmatpush1.bf16.msra.mxu0 %v230_v10 }
  0x39   :  { %143 = vmatprep.subr.bf16.mxu0 %v231_v11 }
  0x3c   :  { %144 = vmatpush1.bf16.msra.mxu0 %v233_v12 }
  0x3d   :  { %208 = vmatprep.subr.msk.bf16.mxu0 %vm126_vm0, %v234_v13 }
  0x40   :  { %146 = vmatpush1.bf16.msra.mxu0 %v128_v15 }
  0x43   :  { %209 = vmatmul.mubr.msk.bf16.vlgmr.msra.gmra.mrb[0].mxu0 %vm122_vm1, %v39_v16 }
 0x116   :  { %v167_v17 = vpop.f32.mrb[0].mxu0 }
 0x117   :  { %v174_v18 = vmax.f32 %v167_v17, 0.0  ;;  %v169_v19 = vpop.f32.mrb[1].mxu0 }
 0x118   :  { %v175_v20 = vmax.f32 %v169_v19, 0.0  ;;  %v171_v21 = vpop.f32.mrb[2].mxu0 }
 0x119   :  { %176 = vst [vmem:[#allocation7] sm:$0xff] %v174_v18  ;;  %v172_v22 = vpop.f32.mrb[3].mxu0 }
 0x11a   :  { %177 = vst [vmem:[#allocation7 + $0x8] sm:$0xff] %v175_v20 }
 0x11b   :  { %292 = shalt.err (!%p289_p6)
}
 0x11c   :  { %s293_s10 = scalar_lea.hbm %s375_s2, 256 }
 0x11d   :  { %p294_p7 = scmp.ne.s32.totalorder %s375_s2, %s293_s10  ;;  %p297_p8 = scmp.lt.u32.totalorder %s293_s10, %s375_s2 }
 0x11f   :  { %p299_p9 = pnand %p297_p8, %p294_p7 }
 0x121   :  { %302 = shalt.err (!%p299_p9)
}
 0x122   :  { %187 = dma.vmem_to_hbm [thread:$0]  %s185_s6, 256, %s375_s2, [#allocation4]  }
 0x123   :  { %307 = dma.done.wait [#allocation4], 256  }
 0x124   :  { %308 = vsyncadd [#allocation4], 4294967040 }
 0x125   :  { %191 = vsyncpa [#allocation3], 1 }
 0x126   :  { %192 = vsyncpa [#allocation6], 1 }
 0x127   :  { %193 = vsyncpa [#allocation4], 1 }

</bundles_post_ra>
